<compile_context>
chip_gen: v7x
topology: tpu7x:2x2x1
jax: 0.10.0
libtpu: 0.0.40
codegen_flags: <defaults>
</compile_context>

<pallas_src>
import jax
import jax.numpy as jnp
from jax.experimental import pallas as pl
from jax.experimental.pallas import tpu as pltpu

# ----- synthetic small config (stands in for `args`) -----
B = 2            # batch size
T_ENC = 8        # encoder sequence length
T = 8            # prompt / response length (padded, equal as in the original batch)
NVT = 8          # args.num_virtual_tokens
H = 32           # hidden size
V = 256          # vocab size (chosen so the vocab axis is actually tiled: NV=2)
L = 4            # args.num_libraries
PAD_ID = 0       # tokenizer.pad_token_id
GUMBEL_EPS = 1e-20
KL_EPS = 1e-8

# ----- kernel tiling -----
TN = 128                 # vocab tile: lane-aligned (multiple of 128)
TM = B * T               # row tile: multiple of T and of the 8-row sublane tile
BM = TM // T             # batch elements per row tile
NR = (B * T) // TM       # row-tile grid extent ("parallel")
NV = V // TN             # vocab-tile grid extent ("arbitrary": online log-softmax)
assert V % TN == 0 and TM % T == 0 and (B * T) % TM == 0 and TM % 8 == 0


# ---------------------------------------------------------------------------
# Fused Pallas kernel: encoder classification head -> gumbel softmax ->
# decoder LM-head online log-softmax over vocab tiles + label gather +
# masked seq-sum -> scale by k_vector.  Grid = (row tiles, vocab tiles).
# ---------------------------------------------------------------------------
def _cvae_fused_kernel(cls_ref, w1_ref, b1_ref, w2_ref, b2_ref, gum_ref,
                       hid_ref, wlm_ref, labels_ref, mask_ref,
                       out_ref,
                       m_scr, se_scr, ll_scr, kv_scr):
    j = pl.program_id(1)

    @pl.when(j == 0)
    def _init():
        m_scr[...] = jnp.full((BM, T, 1), -jnp.inf, jnp.float32)
        se_scr[...] = jnp.zeros((BM, T, 1), jnp.float32)
        ll_scr[...] = jnp.zeros((BM, T, 1), jnp.float32)
        # encoder head: dense -> tanh -> out_proj (bf16 MXU operands, f32 epilogue)
        # TODO(synk): torch.nn.Dropout is train-mode stochastic; identity here
        # (eval-mode semantics).
        h = jnp.tanh(jnp.dot(cls_ref[...], w1_ref[...],
                             preferred_element_type=jnp.float32) + b1_ref[...])
        clf = jnp.dot(h.astype(jnp.bfloat16), w2_ref[...],
                      preferred_element_type=jnp.float32) + b2_ref[...]     # (BM, L)
        # gumbel softmax (temperature = 1.0), all f32
        y = clf + gum_ref[...]
        y = y - jnp.max(y, axis=-1, keepdims=True)
        ey = jnp.exp(y)
        kv_scr[...] = ey / jnp.sum(ey, axis=-1, keepdims=True)              # (BM, L)

    # ---- LM head for this (row tile, vocab tile): bf16 MXU, f32 accumulate ----
    logits = jnp.dot(hid_ref[...], wlm_ref[...],
                     preferred_element_type=jnp.float32)                     # (TM, TN)
    logits = logits.reshape(BM, T, TN)

    # ---- online log-softmax update (running max / sum-exp across vocab tiles) ----
    tile_max = jnp.max(logits, axis=-1, keepdims=True)                       # (BM, T, 1)
    m_old = m_scr[...]
    m_new = jnp.maximum(m_old, tile_max)
    corr = jnp.exp(m_old - m_new)
    se_scr[...] = se_scr[...] * corr + jnp.sum(jnp.exp(logits - m_new),
                                               axis=-1, keepdims=True)
    m_scr[...] = m_new

    # ---- label gather for this vocab tile: iota carries the tile's vocab offset ----
    vocab_ids = jax.lax.broadcasted_iota(jnp.int32, (BM, T, TN), 2) + j * TN
    hit = vocab_ids == labels_ref[...][:, :, None]                           # int32 cmp
    ll_scr[...] += jnp.sum(jnp.where(hit, logits, 0.0), axis=-1, keepdims=True)

    @pl.when(j == pl.num_programs(1) - 1)
    def _finalize():
        # logpy = logits[label] - logsumexp = label_logit - (m + log(sum_exp))
        logpy = ll_scr[...] - m_scr[...] - jnp.log(se_scr[...])              # (BM, T, 1)
        resp = jnp.sum(logpy * mask_ref[...][:, :, None], axis=1)            # (BM, 1)
        # lane-dense packed output slab: [resp_log_prob | k_vector]
        out_ref[:, 0:L] = resp * kv_scr[...]
        out_ref[:, L:2 * L] = kv_scr[...]


def _vmem_limit_bytes():
    # Per-step working set: double-buffered bf16 (H, TN) weight slab +
    # double-buffered bf16 (TM, H) hidden rows + f32 logits tile + small
    # operands / scratch, with generous headroom.  Clamped to <=32 MiB so it
    # is valid on v5e/v6e (128 MiB) and v7x (64 MiB) alike.
    weight_tiles = 2 * (H * TN * 2)
    hid_tiles = 2 * (TM * H * 2)
    logits_tile = TM * TN * 4
    small = 256 * 1024
    budget = 4 * (weight_tiles + hid_tiles + logits_tile + small)
    return int(min(max(budget, 8 << 20), 32 << 20))


def cvae_fused_call(cls_bf16, w1_bf16, b1, w2_bf16, b2, gumbel,
                    hid_bf16, wlm_bf16, labels, mask):
    packed = pl.pallas_call(
        _cvae_fused_kernel,
        out_shape=jax.ShapeDtypeStruct((B, 2 * L), jnp.float32),
        grid=(NR, NV),
        in_specs=[
            pl.BlockSpec((BM, H), lambda i, j: (i, 0)),      # cls (bf16)
            pl.BlockSpec((H, H), lambda i, j: (0, 0)),       # dense_w (bf16)
            pl.BlockSpec((1, H), lambda i, j: (0, 0)),       # dense_b (f32)
            pl.BlockSpec((H, L), lambda i, j: (0, 0)),       # out_w (bf16)
            pl.BlockSpec((1, L), lambda i, j: (0, 0)),       # out_b (f32)
            pl.BlockSpec((BM, L), lambda i, j: (i, 0)),      # gumbel noise (f32)
            pl.BlockSpec((TM, H), lambda i, j: (i, 0)),      # hidden rows (bf16)
            pl.BlockSpec((H, TN), lambda i, j: (0, j)),      # LM-head vocab slab (bf16)
            pl.BlockSpec((BM, T), lambda i, j: (i, 0)),      # labels (int32)
            pl.BlockSpec((BM, T), lambda i, j: (i, 0)),      # response mask (f32)
        ],
        out_specs=pl.BlockSpec((BM, 2 * L), lambda i, j: (i, 0)),
        scratch_shapes=[
            pltpu.VMEM((BM, T, 1), jnp.float32),   # running max
            pltpu.VMEM((BM, T, 1), jnp.float32),   # running sum-exp
            pltpu.VMEM((BM, T, 1), jnp.float32),   # accumulated label logit
            pltpu.VMEM((BM, L), jnp.float32),      # k_vector for this row tile
        ],
        compiler_params=pltpu.CompilerParams(
            dimension_semantics=("parallel", "arbitrary"),
            vmem_limit_bytes=_vmem_limit_bytes()),
    )(cls_bf16, w1_bf16, b1, w2_bf16, b2, gumbel,
      hid_bf16, wlm_bf16, labels, mask)
    return packed[:, :L], packed[:, L:]


# ---------------------------------------------------------------------------
# Deterministic synthetic parameters (shapes implied by the module __init__).
# ---------------------------------------------------------------------------
def init_params(key):
    ks = jax.random.split(key, 6)
    std = 0.02  # config.initializer_range
    return {
        "emb_enc": jax.random.normal(ks[0], (V, H), jnp.float32) * std,
        "dense_w": jax.random.normal(ks[1], (H, H), jnp.float32) * std,
        "dense_b": jnp.zeros((1, H), jnp.float32),
        "out_w": jax.random.normal(ks[2], (H, L), jnp.float32) * std,
        "out_b": jnp.zeros((1, L), jnp.float32),
        "emb_dec": jax.random.normal(ks[3], (V, H), jnp.float32) * std,
        "vt": jax.random.normal(ks[4], (L, NVT, H), jnp.float32) * std,   # per-library virtual tokens
        "w_lm": jax.random.normal(ks[5], (H, V), jnp.float32) * std,      # LM head
    }


# ---------------------------------------------------------------------------
# Lib_cVAE.forward equivalent
# ---------------------------------------------------------------------------
def lib_cvae_forward(params, batch, gumbel_key):
    enc_ids, enc_mask, prompt, prompt_mask, response, response_mask = batch

    # ---- encoder (ClarificationCodeBERTPredictor) ----
    # TODO(synk): pretrained CodeBERT base not replicated (checkpoint-dependent);
    # the CLS feature is a mask-weighted mean of synthetic token embeddings.
    tok = params["emb_enc"][enc_ids]                                   # (B, T_ENC, H)
    denom = jnp.clip(jnp.sum(enc_mask, axis=1, keepdims=True), 1.0, None)
    cls = jnp.sum(tok * enc_mask[:, :, None], axis=1) / denom          # (B, H)

    # gumbel noise (same draw as the reference: uniform over (B, L))
    U = jax.random.uniform(gumbel_key, (B, L), jnp.float32)
    gumbel = -jnp.log(-jnp.log(U + GUMBEL_EPS) + GUMBEL_EPS)

    # ---- decoder labels / mask (get_response_log_probs_for_lib semantics) ----
    # The NVT virtual-token prefix carries a zero mask, so those rows are
    # dropped from the kernel entirely; only the response rows are scored.
    labels = jnp.where(response == -100, PAD_ID, response).astype(jnp.int32)  # (B, T)
    mask = response_mask.astype(jnp.float32)                                  # (B, T)

    # ---- decoder hidden states feeding the LM head ----
    # TODO(synk): pretrained causal-LM transformer body not replicated; the
    # LM-head input for the scored (response) rows is the prompt embedding,
    # identical for every library in this stub, so logits are computed once and
    # scaled by k_vector.  Restore a per-library "parallel" grid axis feeding
    # (TM, H) hidden tiles when a real library-conditioned decoder is plugged in.
    prompt_emb = params["emb_dec"][prompt]                             # (B, T, H)
    hid_bf16 = prompt_emb.reshape(B * T, H).astype(jnp.bfloat16)
    wlm_bf16 = params["w_lm"].astype(jnp.bfloat16)

    resp_log_prob, k_vector = cvae_fused_call(
        cls.astype(jnp.bfloat16),
        params["dense_w"].astype(jnp.bfloat16), params["dense_b"],
        params["out_w"].astype(jnp.bfloat16), params["out_b"], gumbel,
        hid_bf16, wlm_bf16, labels, mask)

    reconstruction_loss = -jnp.sum(resp_log_prob, axis=-1).mean()
    kl_div = jnp.sum(k_vector * jnp.log(k_vector * L + KL_EPS), axis=-1).mean()
    loss = reconstruction_loss + kl_div
    return loss, reconstruction_loss, kl_div, resp_log_prob, k_vector


# ---------------------------------------------------------------------------
# Pure-JAX reference (no Pallas, full per-library loop incl. virtual tokens).
# ---------------------------------------------------------------------------
def reference_forward(params, batch, gumbel_key):
    enc_ids, enc_mask, prompt, prompt_mask, response, response_mask = batch
    tok = params["emb_enc"][enc_ids]
    denom = jnp.clip(jnp.sum(enc_mask, axis=1, keepdims=True), 1.0, None)
    cls = jnp.sum(tok * enc_mask[:, :, None], axis=1) / denom
    h = jnp.tanh(cls @ params["dense_w"] + params["dense_b"])
    clf_logits = h @ params["out_w"] + params["out_b"]
    U = jax.random.uniform(gumbel_key, clf_logits.shape, jnp.float32)
    gumbel = -jnp.log(-jnp.log(U + GUMBEL_EPS) + GUMBEL_EPS)
    k_vector = jax.nn.softmax(clf_logits + gumbel, axis=-1)
    prefix = jnp.full((B, NVT), -100, jnp.int32)
    labels = jnp.concatenate([prefix, response], axis=1)
    labels = jnp.where(labels == -100, PAD_ID, labels)
    mask = jnp.concatenate([jnp.zeros((B, NVT), jnp.float32), response_mask], axis=1)
    prompt_emb = params["emb_dec"][prompt]
    resp_log_prob = jnp.zeros((B, L), jnp.float32)
    for k in range(L):
        hid = jnp.concatenate(
            [jnp.broadcast_to(params["vt"][k][None], (B, NVT, H)), prompt_emb], axis=1)
        logits = hid @ params["w_lm"]
        logp = jax.nn.log_softmax(logits, axis=-1)
        logpy = jnp.take_along_axis(logp, labels[:, :, None], axis=2)[..., 0]
        lp = jnp.sum(logpy * mask, axis=1)
        resp_log_prob = resp_log_prob.at[:, k].set(lp * k_vector[:, k])
    recon = -jnp.sum(resp_log_prob, axis=-1).mean()
    kl = jnp.sum(k_vector * jnp.log(k_vector * L + KL_EPS), axis=-1).mean()
    return recon + kl, recon, kl, resp_log_prob, k_vector


if __name__ == "__main__":
    key = jax.random.PRNGKey(0)
    pkey, ikey, gkey = jax.random.split(key, 3)
    params = init_params(pkey)

    ks = jax.random.split(ikey, 3)
    enc_ids = jax.random.randint(ks[0], (B, T_ENC), 0, V, jnp.int32)
    enc_mask = jnp.ones((B, T_ENC), jnp.float32)
    prompt = jax.random.randint(ks[1], (B, T), 1, V, jnp.int32)
    prompt_mask = jnp.ones((B, T), jnp.float32)
    response = jax.random.randint(ks[2], (B, T), 1, V, jnp.int32)
    response_mask = jnp.ones((B, T), jnp.float32).at[:, -2:].set(0.0)
    response = response.at[:, -1].set(-100)        # padded label positions use -100
    batch = (enc_ids, enc_mask, prompt, prompt_mask, response, response_mask)

    fwd = jax.jit(lib_cvae_forward)
    loss, recon, kl, resp_lp, kvec = jax.block_until_ready(
        fwd(params, batch, gkey))

    ref_loss, ref_recon, ref_kl, ref_resp, ref_kvec = reference_forward(
        params, batch, gkey)
    assert jnp.allclose(kvec, ref_kvec, atol=2e-3, rtol=2e-3), (kvec, ref_kvec)
    assert jnp.allclose(resp_lp, ref_resp, atol=2e-3, rtol=2e-3), (resp_lp, ref_resp)
    assert jnp.allclose(loss, ref_loss, atol=2e-3, rtol=2e-3), (loss, ref_loss)

    print("KERNEL_OK")
</pallas_src>

<mosaic_0001>
module attributes {stable_mosaic.version = 11 : i64} {
  func.func @_cvae_fused_kernel(%arg0: i32, %arg1: i32, %arg2: memref<2x32xbf16, #tpu.memory_space<vmem>>, %arg3: memref<32x32xbf16, #tpu.memory_space<vmem>>, %arg4: memref<1x32xf32, #tpu.memory_space<vmem>>, %arg5: memref<32x4xbf16, #tpu.memory_space<vmem>>, %arg6: memref<1x4xf32, #tpu.memory_space<vmem>>, %arg7: memref<2x4xf32, #tpu.memory_space<vmem>>, %arg8: memref<16x32xbf16, #tpu.memory_space<vmem>>, %arg9: memref<32x128xbf16, #tpu.memory_space<vmem>>, %arg10: memref<2x8xi32, #tpu.memory_space<vmem>>, %arg11: memref<2x8xf32, #tpu.memory_space<vmem>>, %arg12: memref<2x8xf32, #tpu.memory_space<vmem>>, %arg13: memref<2x8x1xf32, #tpu.memory_space<vmem>>, %arg14: memref<2x8x1xf32, #tpu.memory_space<vmem>>, %arg15: memref<2x8x1xf32, #tpu.memory_space<vmem>>, %arg16: memref<2x4xf32, #tpu.memory_space<vmem>>) attributes {dimension_semantics = [#tpu.dimension_semantics<parallel>, #tpu.dimension_semantics<arbitrary>], iteration_bounds = array<i64: 1, 2>, scalar_prefetch = 0 : i64, scratch_operands = 4 : i64, tpu.core_type = #tpu.core_type<tc>, window_params = [{transform_indices = @transform_0, window_bounds = array<i64: 2, 32>}, {pipeline_mode = #tpu.pipeline_mode<synchronous>, transform_indices = @transform_1, window_bounds = array<i64: 32, 32>}, {pipeline_mode = #tpu.pipeline_mode<synchronous>, transform_indices = @transform_2, window_bounds = array<i64: 1, 32>}, {pipeline_mode = #tpu.pipeline_mode<synchronous>, transform_indices = @transform_3, window_bounds = array<i64: 32, 4>}, {pipeline_mode = #tpu.pipeline_mode<synchronous>, transform_indices = @transform_4, window_bounds = array<i64: 1, 4>}, {transform_indices = @transform_5, window_bounds = array<i64: 2, 4>}, {transform_indices = @transform_6, window_bounds = array<i64: 16, 32>}, {transform_indices = @transform_7, window_bounds = array<i64: 32, 128>}, {transform_indices = @transform_8, window_bounds = array<i64: 2, 8>}, {transform_indices = @transform_9, window_bounds = array<i64: 2, 8>}, {transform_indices = @transform_10, window_bounds = array<i64: 2, 8>}]} {
    %c0_i32 = arith.constant 0 : i32
    %0 = arith.cmpi eq, %arg1, %c0_i32 : i32
    %1 = arith.extui %0 : i1 to i32
    %c0_i32_0 = arith.constant 0 : i32
    %2 = arith.cmpi ne, %1, %c0_i32_0 : i32
    scf.if %2 {
      %cst_29 = arith.constant 0xFF800000 : f32
      %41 = vector.broadcast %cst_29 : f32 to vector<2x8x1xf32>
      %c0_30 = arith.constant 0 : index
      %c0_31 = arith.constant 0 : index
      %c0_32 = arith.constant 0 : index
      %42 = vector.load %arg13[%c0_30, %c0_31, %c0_32] : memref<2x8x1xf32, #tpu.memory_space<vmem>>, vector<2x8x1xf32>
      tpu.vector_store %arg13[%c0_30, %c0_31, %c0_32], %41 {strides = array<i32>} : memref<2x8x1xf32, #tpu.memory_space<vmem>>, vector<2x8x1xf32>,
      %cst_33 = arith.constant 0.000000e+00 : f32
      %43 = vector.broadcast %cst_33 : f32 to vector<2x8x1xf32>
      %c0_34 = arith.constant 0 : index
      %c0_35 = arith.constant 0 : index
      %c0_36 = arith.constant 0 : index
      %44 = vector.load %arg14[%c0_34, %c0_35, %c0_36] : memref<2x8x1xf32, #tpu.memory_space<vmem>>, vector<2x8x1xf32>
      tpu.vector_store %arg14[%c0_34, %c0_35, %c0_36], %43 {strides = array<i32>} : memref<2x8x1xf32, #tpu.memory_space<vmem>>, vector<2x8x1xf32>,
      %cst_37 = arith.constant 0.000000e+00 : f32
      %45 = vector.broadcast %cst_37 : f32 to vector<2x8x1xf32>
      %c0_38 = arith.constant 0 : index
      %c0_39 = arith.constant 0 : index
      %c0_40 = arith.constant 0 : index
      %46 = vector.load %arg15[%c0_38, %c0_39, %c0_40] : memref<2x8x1xf32, #tpu.memory_space<vmem>>, vector<2x8x1xf32>
      tpu.vector_store %arg15[%c0_38, %c0_39, %c0_40], %45 {strides = array<i32>} : memref<2x8x1xf32, #tpu.memory_space<vmem>>, vector<2x8x1xf32>,
      %c0_41 = arith.constant 0 : index
      %c0_42 = arith.constant 0 : index
      %47 = vector.load %arg2[%c0_41, %c0_42] : memref<2x32xbf16, #tpu.memory_space<vmem>>, vector<2x32xbf16>
      %c0_43 = arith.constant 0 : index
      %c0_44 = arith.constant 0 : index
      %48 = vector.load %arg3[%c0_43, %c0_44] : memref<32x32xbf16, #tpu.memory_space<vmem>>, vector<32x32xbf16>
      %cst_45 = arith.constant dense<0.000000e+00> : vector<2x32xf32>
      %49 = tpu.matmul %47, %48, %cst_45 {dimension_numbers = #tpu.dot_dimension_numbers<[1], [0], [0], [1], [0, 0, 1, 1], [], []>} : vector<2x32xbf16>, vector<32x32xbf16>, vector<2x32xf32> -> vector<2x32xf32>
      %c0_46 = arith.constant 0 : index
      %c0_47 = arith.constant 0 : index
      %50 = vector.load %arg4[%c0_46, %c0_47] : memref<1x32xf32, #tpu.memory_space<vmem>>, vector<1x32xf32>
      %51 = vector.broadcast %50 : vector<1x32xf32> to vector<2x32xf32>
      %52 = arith.addf %49, %51 : vector<2x32xf32>
      %53 = math.tanh %52 : vector<2x32xf32>
      %54 = arith.truncf %53 : vector<2x32xf32> to vector<2x32xbf16>
      %c0_48 = arith.constant 0 : index
      %c0_49 = arith.constant 0 : index
      %55 = vector.load %arg5[%c0_48, %c0_49] : memref<32x4xbf16, #tpu.memory_space<vmem>>, vector<32x4xbf16>
      %cst_50 = arith.constant dense<0.000000e+00> : vector<2x4xf32>
      %56 = tpu.matmul %54, %55, %cst_50 {dimension_numbers = #tpu.dot_dimension_numbers<[1], [0], [0], [1], [0, 0, 1, 1], [], []>} : vector<2x32xbf16>, vector<32x4xbf16>, vector<2x4xf32> -> vector<2x4xf32>
      %c0_51 = arith.constant 0 : index
      %c0_52 = arith.constant 0 : index
      %57 = vector.load %arg6[%c0_51, %c0_52] : memref<1x4xf32, #tpu.memory_space<vmem>>, vector<1x4xf32>
      %58 = vector.broadcast %57 : vector<1x4xf32> to vector<2x4xf32>
      %59 = arith.addf %56, %58 : vector<2x4xf32>
      %c0_53 = arith.constant 0 : index
      %c0_54 = arith.constant 0 : index
      %60 = vector.load %arg7[%c0_53, %c0_54] : memref<2x4xf32, #tpu.memory_space<vmem>>, vector<2x4xf32>
      %61 = arith.addf %59, %60 : vector<2x4xf32>
      %cst_55 = arith.constant dense<0xFF800000> : vector<2xf32>
      %62 = vector.multi_reduction <maximumf>, %61, %cst_55 [1] : vector<2x4xf32> to vector<2xf32>
      %63 = vector.shape_cast %62 : vector<2xf32> to vector<2x1xf32>
      %64 = vector.broadcast %63 : vector<2x1xf32> to vector<2x4xf32>
      %65 = arith.subf %61, %64 : vector<2x4xf32>
      %66 = math.exp %65 : vector<2x4xf32>
      %cst_56 = arith.constant dense<0.000000e+00> : vector<2xf32>
      %67 = vector.multi_reduction <add>, %66, %cst_56 [1] : vector<2x4xf32> to vector<2xf32>
      %68 = vector.shape_cast %67 : vector<2xf32> to vector<2x1xf32>
      %69 = vector.broadcast %68 : vector<2x1xf32> to vector<2x4xf32>
      %70 = arith.divf %66, %69 : vector<2x4xf32>
      %c0_57 = arith.constant 0 : index
      %c0_58 = arith.constant 0 : index
      %71 = vector.load %arg16[%c0_57, %c0_58] : memref<2x4xf32, #tpu.memory_space<vmem>>, vector<2x4xf32>
      tpu.vector_store %arg16[%c0_57, %c0_58], %70 {strides = array<i32>} : memref<2x4xf32, #tpu.memory_space<vmem>>, vector<2x4xf32>,
    } else {
    }
    %c0 = arith.constant 0 : index
    %c0_1 = arith.constant 0 : index
    %3 = vector.load %arg8[%c0, %c0_1] : memref<16x32xbf16, #tpu.memory_space<vmem>>, vector<16x32xbf16>
    %c0_2 = arith.constant 0 : index
    %c0_3 = arith.constant 0 : index
    %4 = vector.load %arg9[%c0_2, %c0_3] : memref<32x128xbf16, #tpu.memory_space<vmem>>, vector<32x128xbf16>
    %cst = arith.constant dense<0.000000e+00> : vector<16x128xf32>
    %5 = tpu.matmul %3, %4, %cst {dimension_numbers = #tpu.dot_dimension_numbers<[1], [0], [0], [1], [0, 0, 1, 1], [], []>} : vector<16x32xbf16>, vector<32x128xbf16>, vector<16x128xf32> -> vector<16x128xf32>
    %6 = vector.shape_cast %5 : vector<16x128xf32> to vector<2x8x128xf32>
    %cst_4 = arith.constant dense<0xFF800000> : vector<2x8xf32>
    %7 = vector.multi_reduction <maximumf>, %6, %cst_4 [2] : vector<2x8x128xf32> to vector<2x8xf32>
    %8 = vector.shape_cast %7 : vector<2x8xf32> to vector<2x8x1xf32>
    %c0_5 = arith.constant 0 : index
    %c0_6 = arith.constant 0 : index
    %c0_7 = arith.constant 0 : index
    %9 = vector.load %arg13[%c0_5, %c0_6, %c0_7] : memref<2x8x1xf32, #tpu.memory_space<vmem>>, vector<2x8x1xf32>
    %10 = arith.maximumf %9, %8 : vector<2x8x1xf32>
    %11 = arith.subf %9, %10 : vector<2x8x1xf32>
    %12 = math.exp %11 : vector<2x8x1xf32>
    %c0_8 = arith.constant 0 : index
    %c0_9 = arith.constant 0 : index
    %c0_10 = arith.constant 0 : index
    %13 = vector.load %arg14[%c0_8, %c0_9, %c0_10] : memref<2x8x1xf32, #tpu.memory_space<vmem>>, vector<2x8x1xf32>
    %14 = arith.mulf %13, %12 : vector<2x8x1xf32>
    %15 = vector.broadcast %10 : vector<2x8x1xf32> to vector<2x8x128xf32>
    %16 = arith.subf %6, %15 : vector<2x8x128xf32>
    %17 = math.exp %16 : vector<2x8x128xf32>
    %cst_11 = arith.constant dense<0.000000e+00> : vector<2x8xf32>
    %18 = vector.multi_reduction <add>, %17, %cst_11 [2] : vector<2x8x128xf32> to vector<2x8xf32>
    %19 = vector.shape_cast %18 : vector<2x8xf32> to vector<2x8x1xf32>
    %20 = arith.addf %14, %19 : vector<2x8x1xf32>
    %c0_12 = arith.constant 0 : index
    %c0_13 = arith.constant 0 : index
    %c0_14 = arith.constant 0 : index
    %21 = vector.load %arg14[%c0_12, %c0_13, %c0_14] : memref<2x8x1xf32, #tpu.memory_space<vmem>>, vector<2x8x1xf32>
    tpu.vector_store %arg14[%c0_12, %c0_13, %c0_14], %20 {strides = array<i32>} : memref<2x8x1xf32, #tpu.memory_space<vmem>>, vector<2x8x1xf32>,
    %c0_15 = arith.constant 0 : index
    %c0_16 = arith.constant 0 : index
    %c0_17 = arith.constant 0 : index
    %22 = vector.load %arg13[%c0_15, %c0_16, %c0_17] : memref<2x8x1xf32, #tpu.memory_space<vmem>>, vector<2x8x1xf32>
    tpu.vector_store %arg13[%c0_15, %c0_16, %c0_17], %10 {strides = array<i32>} : memref<2x8x1xf32, #tpu.memory_space<vmem>>, vector<2x8x1xf32>,
    %23 = tpu.iota {dimensions = array<i32: 2>} : vector<2x8x128xi32>
    %c128_i32 = arith.constant 128 : i32
    %24 = arith.muli %arg1, %c128_i32 : i32
    %25 = vector.broadcast %24 : i32 to vector<2x8x128xi32>
    %26 = arith.addi %23, %25 : vector<2x8x128xi32>
    %c0_18 = arith.constant 0 : index
    %c0_19 = arith.constant 0 : index
    %27 = vector.load %arg10[%c0_18, %c0_19] : memref<2x8xi32, #tpu.memory_space<vmem>>, vector<2x8xi32>
    %28 = vector.shape_cast %27 : vector<2x8xi32> to vector<2x8x1xi32>
    %29 = vector.broadcast %28 : vector<2x8x1xi32> to vector<2x8x128xi32>
    %30 = arith.cmpi eq, %26, %29 : vector<2x8x128xi32>
    %c0_20 = arith.constant 0 : index
    %c0_21 = arith.constant 0 : index
    %c0_22 = arith.constant 0 : index
    %31 = vector.load %arg15[%c0_20, %c0_21, %c0_22] : memref<2x8x1xf32, #tpu.memory_space<vmem>>, vector<2x8x1xf32>
    %cst_23 = arith.constant 0.000000e+00 : f32
    %32 = vector.broadcast %cst_23 : f32 to vector<2x8x128xf32>
    %33 = arith.select %30, %6, %32 : vector<2x8x128xi1>, vector<2x8x128xf32>
    %cst_24 = arith.constant dense<0.000000e+00> : vector<2x8xf32>
    %34 = vector.multi_reduction <add>, %33, %cst_24 [2] : vector<2x8x128xf32> to vector<2x8xf32>
    %35 = vector.shape_cast %34 : vector<2x8xf32> to vector<2x8x1xf32>
    %36 = arith.addf %31, %35 : vector<2x8x1xf32>
    %c0_25 = arith.constant 0 : index
    %c0_26 = arith.constant 0 : index
    %c0_27 = arith.constant 0 : index
    %37 = vector.load %arg15[%c0_25, %c0_26, %c0_27] : memref<2x8x1xf32, #tpu.memory_space<vmem>>, vector<2x8x1xf32>
    tpu.vector_store %arg15[%c0_25, %c0_26, %c0_27], %36 {strides = array<i32>} : memref<2x8x1xf32, #tpu.memory_space<vmem>>, vector<2x8x1xf32>,
    %c1_i32 = arith.constant 1 : i32
    %38 = arith.cmpi eq, %arg1, %c1_i32 : i32
    %39 = arith.extui %38 : i1 to i32
    %c0_i32_28 = arith.constant 0 : i32
    %40 = arith.cmpi ne, %39, %c0_i32_28 : i32
    scf.if %40 {
      %c0_29 = arith.constant 0 : index
      %c0_30 = arith.constant 0 : index
      %c0_31 = arith.constant 0 : index
      %41 = vector.load %arg15[%c0_29, %c0_30, %c0_31] : memref<2x8x1xf32, #tpu.memory_space<vmem>>, vector<2x8x1xf32>
      %c0_32 = arith.constant 0 : index
      %c0_33 = arith.constant 0 : index
      %c0_34 = arith.constant 0 : index
      %42 = vector.load %arg13[%c0_32, %c0_33, %c0_34] : memref<2x8x1xf32, #tpu.memory_space<vmem>>, vector<2x8x1xf32>
      %43 = arith.subf %41, %42 : vector<2x8x1xf32>
      %c0_35 = arith.constant 0 : index
      %c0_36 = arith.constant 0 : index
      %c0_37 = arith.constant 0 : index
      %44 = vector.load %arg14[%c0_35, %c0_36, %c0_37] : memref<2x8x1xf32, #tpu.memory_space<vmem>>, vector<2x8x1xf32>
      %45 = math.log %44 : vector<2x8x1xf32>
      %46 = arith.subf %43, %45 : vector<2x8x1xf32>
      %c0_38 = arith.constant 0 : index
      %c0_39 = arith.constant 0 : index
      %47 = vector.load %arg11[%c0_38, %c0_39] : memref<2x8xf32, #tpu.memory_space<vmem>>, vector<2x8xf32>
      %48 = vector.shape_cast %47 : vector<2x8xf32> to vector<2x8x1xf32>
      %49 = arith.mulf %46, %48 : vector<2x8x1xf32>
      %cst_40 = arith.constant dense<0.000000e+00> : vector<2x1xf32>
      %50 = vector.multi_reduction <add>, %49, %cst_40 [1] : vector<2x8x1xf32> to vector<2x1xf32>
      %c0_41 = arith.constant 0 : index
      %c0_42 = arith.constant 0 : index
      %51 = vector.load %arg16[%c0_41, %c0_42] : memref<2x4xf32, #tpu.memory_space<vmem>>, vector<2x4xf32>
      %52 = vector.broadcast %50 : vector<2x1xf32> to vector<2x4xf32>
      %53 = arith.mulf %52, %51 : vector<2x4xf32>
      %c0_43 = arith.constant 0 : index
      %c0_44 = arith.constant 0 : index
      %54 = vector.load %arg12[%c0_43, %c0_44] : memref<2x8xf32, #tpu.memory_space<vmem>>, vector<2x4xf32>
      tpu.vector_store %arg12[%c0_43, %c0_44], %53 {strides = array<i32>} : memref<2x8xf32, #tpu.memory_space<vmem>>, vector<2x4xf32>,
      %c0_45 = arith.constant 0 : index
      %c0_46 = arith.constant 0 : index
      %55 = vector.load %arg16[%c0_45, %c0_46] : memref<2x4xf32, #tpu.memory_space<vmem>>, vector<2x4xf32>
      %c0_47 = arith.constant 0 : index
      %c4 = arith.constant 4 : index
      %56 = vector.load %arg12[%c0_47, %c4] : memref<2x8xf32, #tpu.memory_space<vmem>>, vector<2x4xf32>
      tpu.vector_store %arg12[%c0_47, %c4], %55 {strides = array<i32>} : memref<2x8xf32, #tpu.memory_space<vmem>>, vector<2x4xf32>,
    } else {
    }
    return
  }
  func.func @transform_0(%arg0: i32, %arg1: i32) -> (i32, i32) {
    %c0_i32 = arith.constant 0 : i32
    %c0_i32_0 = arith.constant 0 : i32
    return %arg0, %c0_i32 : i32, i32
  }
  func.func @transform_1(%arg0: i32, %arg1: i32) -> (i32, i32) {
    %c0_i32 = arith.constant 0 : i32
    %c0_i32_0 = arith.constant 0 : i32
    %c0_i32_1 = arith.constant 0 : i32
    return %c0_i32, %c0_i32_0 : i32, i32
  }
  func.func @transform_2(%arg0: i32, %arg1: i32) -> (i32, i32) {
    %c0_i32 = arith.constant 0 : i32
    %c0_i32_0 = arith.constant 0 : i32
    %c0_i32_1 = arith.constant 0 : i32
    return %c0_i32, %c0_i32_0 : i32, i32
  }
  func.func @transform_3(%arg0: i32, %arg1: i32) -> (i32, i32) {
    %c0_i32 = arith.constant 0 : i32
    %c0_i32_0 = arith.constant 0 : i32
    %c0_i32_1 = arith.constant 0 : i32
    return %c0_i32, %c0_i32_0 : i32, i32
  }
  func.func @transform_4(%arg0: i32, %arg1: i32) -> (i32, i32) {
    %c0_i32 = arith.constant 0 : i32
    %c0_i32_0 = arith.constant 0 : i32
    %c0_i32_1 = arith.constant 0 : i32
    return %c0_i32, %c0_i32_0 : i32, i32
  }
  func.func @transform_5(%arg0: i32, %arg1: i32) -> (i32, i32) {
    %c0_i32 = arith.constant 0 : i32
    %c0_i32_0 = arith.constant 0 : i32
    return %arg0, %c0_i32 : i32, i32
  }
  func.func @transform_6(%arg0: i32, %arg1: i32) -> (i32, i32) {
    %c0_i32 = arith.constant 0 : i32
    %c0_i32_0 = arith.constant 0 : i32
    return %arg0, %c0_i32 : i32, i32
  }
  func.func @transform_7(%arg0: i32, %arg1: i32) -> (i32, i32) {
    %c0_i32 = arith.constant 0 : i32
    %c0_i32_0 = arith.constant 0 : i32
    return %c0_i32, %arg1 : i32, i32
  }
  func.func @transform_8(%arg0: i32, %arg1: i32) -> (i32, i32) {
    %c0_i32 = arith.constant 0 : i32
    %c0_i32_0 = arith.constant 0 : i32
    return %arg0, %c0_i32 : i32, i32
  }
  func.func @transform_9(%arg0: i32, %arg1: i32) -> (i32, i32) {
    %c0_i32 = arith.constant 0 : i32
    %c0_i32_0 = arith.constant 0 : i32
    return %arg0, %c0_i32 : i32, i32
  }
  func.func @transform_10(%arg0: i32, %arg1: i32) -> (i32, i32) {
    %c0_i32 = arith.constant 0 : i32
    %c0_i32_0 = arith.constant 0 : i32
    return %arg0, %c0_i32 : i32, i32
  }
}

</mosaic_0001>

<bundles_post_ra>
// kernel: lib_cvae_forward.1
= control target key start
LH: loop header
LB: loop body
LE: loop exit
PB: predicated region body
PF: predicated region fallthrough
CT: control target
= control target key end

     0   :  { %s1281_s13 = smov 0   ;;  %s1283_s14 = smov 0   ;;  %s1412_s0 = inlined_call_operand.vmem [shape: bf16[2,32], index: 0, kind: input, shape index: {}]   ;;  %s1413_s1 = inlined_call_operand.vmem [shape: bf16[32,32], index: 1, kind: input, shape index: {}]   ;;  %s1414_s2 = inlined_call_operand.vmem [shape: f32[1,32], index: 2, kind: input, shape index: {}]   ;;  %s1415_s3 = inlined_call_operand.vmem [shape: bf16[32,4], index: 3, kind: input, shape index: {}]   ;;  %s1416_s4 = inlined_call_operand.vmem [shape: f32[1,4], index: 4, kind: input, shape index: {}]   ;;  %s1417_s5 = inlined_call_operand.vmem [shape: f32[2,4], index: 5, kind: input, shape index: {}]   ;;  %s1418_s6 = inlined_call_operand.vmem [shape: bf16[16,32], index: 6, kind: input, shape index: {}]   ;;  %s1419_s7 = inlined_call_operand.vmem [shape: bf16[32,256], index: 7, kind: input, shape index: {}]   ;;  %s1420_s8 = inlined_call_operand.vmem [shape: s32[2,8], index: 8, kind: input, shape index: {}]   ;;  %s1421_s9 = inlined_call_operand.vmem [shape: f32[2,8], index: 9, kind: input, shape index: {}]   ;;  %s1422_s10 = inlined_call_operand.vmem [shape: f32[2,8], index: 10, kind: output, shape index: {}]  }
   0x1   :  { %s1285_s15 = smov 0   ;;  %s1287_s16 = smov 0  }
   0x2   :  { %s1289_s17 = smov 0  }
   0x3 LB: > { %s29_s18 = sadd.s32 1, %s1212_s16  ;;  %p208_p1 = scmp.ne.s32.totalorder %s1204_s14, %s1200_s13  ;;  %s1216_s17 = sphi %s1289_s17, %s20_s17   ;;  %s1212_s16 = sphi %s1287_s16, %s1426_s16   ;;  %s1208_s15 = sphi %s1285_s15, %s1425_s15   ;;  %s1204_s14 = sphi %s1283_s14, %s1424_s14   ;;  %s1200_s13 = sphi %s1281_s13, %s1423_s13  }
   0x4   : > { %p30_p0 = scmp.ge.s32.totalorder %s29_s18, 2  ;;  %p209_p2 = scmp.eq.s32.totalorder %s1216_s17, 0 }
   0x5   : > { %s201_s20 = sadd.s32 1, %s1204_s14  ;;  %p1045_p5 = scmp.ge.s32.totalorder %s1216_s17, 2 }
   0x6   : > { %s1428_s18 = smov (%p30_p0, %s29_s18), 0  ;;  %p210_p3 = por %p209_p2, %p208_p1 }
   0x7   : > { %s198_s19 = ssub.s32 %s1212_s16, %s1428_s18  ;;  %360 = sbr.rel (%p1045_p5) target bundleno = 21 (0x15), region = 52 }
   0x8   : > { %p199_p4 = scmp.eq.s32.totalorder %s198_s19, 0 }
   0xa   : > { %s1316_s21 = scalar_select %p199_p4, %s1204_s14, %s201_s20  }
   0xe   : > { %363 = sbr.rel (!%p210_p3) target bundleno = 21 (0x15), region = 56  ;;  %s365_s22 = sand.u32 (%p210_p3), 1, %s1204_s14  }
   0xf   : > { %s1047_s23 = sshll.u32 (%p210_p3), %s1212_s16, 2  ;;  %s1046_s24 = sshll.u32 (%p210_p3), %s365_s22, 4 }
  0x10   : > { %s369_s27 = scalar_lea.vmem (%p210_p3), %s1419_s7, %s1047_s23  ;;  %s367_s28 = scalar_lea.vmem (%p210_p3), [#allocation6], %s1046_s24 }
  0x11   : > { %v385_v0 = vld [vmem:[%s369_s27] sm:$0xf] (%p210_p3)  ;;  %v387_v1 = vld [vmem:[%s369_s27 + $0x8] sm:$0xf] (%p210_p3)  ;;  %v389_v2 = vld [vmem:[%s369_s27 + $0x10] sm:$0xf] (%p210_p3) }
  0x12   : > { %386 = vst [vmem:[%s367_s28] sm:$0xf] (%p210_p3), %v385_v0  ;;  %388 = vst [vmem:[%s367_s28 + $0x4] sm:$0xf] (%p210_p3), %v387_v1  ;;  %v391_v3 = vld [vmem:[%s369_s27 + $0x18] sm:$0xf] (%p210_p3) }
  0x13   : > { %390 = vst [vmem:[%s367_s28 + $0x8] sm:$0xf] (%p210_p3), %v389_v2  ;;  %392 = vst [vmem:[%s367_s28 + $0xc] sm:$0xf] (%p210_p3), %v391_v3 }
  0x15 PF: > { %p1048_p6 = scmp.ge.s32.totalorder %s1216_s17, 1  ;;  %p422_p7 = scmp.lt.s32.totalorder %s1216_s17, 3 }
  0x17   : > { %p423_p8 = pnand %p1048_p6, %p422_p7 }
  0x18   : > { %s429_s29 = sand.u32 (!%p423_p8), 1, %s1200_s13   ;;  %p1050_p9 = scmp.ne.s32.totalorder (!%p423_p8), %s1208_s15, 0 }
  0x19   : > { %426 = sbr.rel (%p423_p8) target bundleno = 1630 (0x65e), region = 97  ;;  %s1327_s30 = sshll.u32 (!%p423_p8), %s429_s29, 4 }
  0x1a   : > { %s431_s11 = scalar_lea.vmem (!%p423_p8), [#allocation6], %s1327_s30 }
  0x20   : > { %514 = sbr.rel (%p1050_p9) target bundleno = 799 (0x31f), region = 105  ;;  %vm515_vm0 = vcmask (!%p1050_p9), 7168   ;;  %v1149_v4 = vld [vmem:[%s1413_s1] sm:$0xff] (!%p1050_p9)   ;;  %v1218_v5 = vmov (!%p1050_p9), -inf   ;;  %v1219_v6 = vmov (!%p1050_p9), 0.0   ;;  %v1150_v7 = vld [vmem:[%s1413_s1 + $0x8] sm:$0xff] (!%p1050_p9)  }
  0x21   : > { %516 = vst.msk [vmem:[#allocation2] sm:$0xff] (!%p1050_p9), %vm515_vm0, %v1218_v5  ;;  %517 = vst.msk [vmem:[#allocation2 + $0x8] sm:$0xff] (!%p1050_p9), %vm515_vm0, %v1218_v5  ;;  %1077 = vmatprep.subr.bf16.mxu0 (!%p1050_p9), %v1219_v6  ;;  %1085 = vmatprep.subr.bf16.mxu1 (!%p1050_p9), %v1219_v6  ;;  %vm1220_vm1 = vmmov (!%p1050_p9), 0   ;;  %v522_v8 = vld [vmem:[%s1412_s0] sm:$0x1] (!%p1050_p9)  ;;  %vm546_vm2 = vcmask (!%p1050_p9), 261120  }
  0x22   : > { %518 = vst.msk [vmem:[#allocation3] sm:$0xff] (!%p1050_p9), %vm515_vm0, %v1219_v6  ;;  %519 = vst.msk [vmem:[#allocation3 + $0x8] sm:$0xff] (!%p1050_p9), %vm515_vm0, %v1219_v6  ;;  %1078 = vmatpush3.bf16.msra.mxu0 (!%p1050_p9), %v1149_v4  ;;  %1081 = vmatprep.mubr.msk.bf16.mxu0 (!%p1050_p9), %vm1220_vm1, %v1219_v6  ;;  %v1151_v9 = vld [vmem:[%s1415_s3] sm:$0xff] (!%p1050_p9)   ;;  %v1152_v10 = vld [vmem:[%s1415_s3 + $0x8] sm:$0xff] (!%p1050_p9)   ;;  %vm660_vm3 = vcmask (!%p1050_p9), 25600  }
  0x23   : > { %520 = vst.msk [vmem:[#allocation4] sm:$0xff] (!%p1050_p9), %vm515_vm0, %v1219_v6  ;;  %521 = vst.msk [vmem:[#allocation4 + $0x8] sm:$0xff] (!%p1050_p9), %vm515_vm0, %v1219_v6  ;;  %1079 = vmatprep.subr.bf16.mxu0 (!%p1050_p9), %v1219_v6  ;;  %1089 = vmatprep.mubr.msk.bf16.mxu1 (!%p1050_p9), %vm1220_vm1, %v1219_v6  ;;  %v1051_v11 = vld [vmem:[%s1414_s2] ss:$0 sm:$0xff] (!%p1050_p9) }
  0x24   : > { %1086 = vmatpush3.bf16.msra.mxu1 (!%p1050_p9), %v1151_v9  ;;  %v1055_v19 = vld [vmem:[%s1416_s4] ss:$0 sm:$0xff] (!%p1050_p9) }
  0x25   : > { %1087 = vmatprep.subr.bf16.mxu1 (!%p1050_p9), %v1219_v6  ;;  %v658_v21 = vld [vmem:[%s1417_s5] sm:$0x3] (!%p1050_p9) }
  0x26   : > { %1080 = vmatpush3.bf16.msra.mxu0 (!%p1050_p9), %v1150_v7 }
  0x28   : > { %1088 = vmatpush3.bf16.msra.mxu1 %v1152_v10 }
  0x29   : > { %1082 = vmatmul.mubr.msk.bf16.vlgmr.msra.gmra.mrb[0].mxu0 %vm546_vm2, %v522_v8 }
  0xfc   : > { %v584_v12 = vpop.f32.mrb[0].mxu0 }
  0xfd   : > { %v585_v13 = vadd.f32 %v1051_v11, %v584_v12  ;;  %v1083_v14 = vpop.f32.mrb[1].mxu0 }
  0xfe   : > { %v587_v15 = vpop.f32.mrb[2].mxu0 }
  0xff   : > { %1153 = vtanh.f32 %v585_v13  ;;  %v1084_v16 = vpop.f32.mrb[3].mxu0 }
 0x109   : > { %v1154_v17 = vpop.eup %1153 }
 0x10a   : > { %v591_v18 = vpack.c.bf16 %v1154_v17, %v1154_v17 }
 0x10c   : > { %1090 = vmatmul.mubr.msk.bf16.vlgmr.msra.gmra.mrb[0].mxu1 %vm546_vm2, %v591_v18 }
 0x1df   : > { %v652_v20 = vpop.f32.mrb[0].mxu1 }
 0x1e0   : > { %v653_v22 = vadd.f32 %v1055_v19, %v652_v20  ;;  %v1091_v23 = vpop.f32.mrb[1].mxu1 }
 0x1e1   : > { %v655_v24 = vpop.f32.mrb[2].mxu1 }
 0x1e2   : > { %v1092_v25 = vpop.f32.mrb[3].mxu1  ;;  %v659_v26 = vadd.f32 %v658_v21, %v653_v22 }
 0x1e4   : > { %v661_v27 = vsel %vm660_vm3, %v659_v26, -inf }
 0x1e5   : > { %662 = vmax.xlane.f32.xlu0 %v661_v27 }
 0x272   : > { %v663_v28 = vpop.xlane.xlu0 %662 }
 0x273   : > { %v664_v29 = vsub.f32 %v659_v26, %v663_v28 }
 0x275   : > { %v665_v30 = vmul.f32 1.442695, %v664_v29 }
 0x277   : > { %1155 = vpow2.f32 %v665_v30 }
 0x281   : > { %v1156_v31 = vpop.eup %1155 }
 0x282   : > { %v667_v32 = vsel %vm660_vm3, %v1156_v31, 0.0 }
 0x283   : > { %668 = vadd.xlane.f32.xlu0 %v667_v32 }
 0x310   : > { %v669_v33 = vpop.xlane.xlu0 %668 }
 0x311   : > { %1157 = vrcp.f32 %v669_v33 }
 0x31b   : > { %v1158_v34 = vpop.eup %1157 }
 0x31c   : > { %v671_v35 = vmul.f32 %v1158_v34, %v1156_v31 }
 0x31e   : > { %672 = vst.msk [vmem:[#allocation5] sm:$0x3] %vm660_vm3, %v671_v35 }
 0x31f PF: > { %v1161_v36 = vld [vmem:[%s431_s11] sm:$0xff]   ;;  %v1221_v37 = vmov 0.0   ;;  %v1162_v38 = vld [vmem:[%s431_s11 + $0x8] sm:$0xff]   ;;  %vm1222_vm4 = vmmov 0   ;;  %vm696_vm5 = vcmask 261120   ;;  %v786_v44 = vlaneseq  ;;  %s1063_s24 = sshll.u32 %s1208_s15, 7 }
 0x320   : > { %1093 = vmatprep.subr.bf16.mxu0 %v1221_v37  ;;  %1097 = vmatprep.mubr.msk.bf16.mxu0 %vm1222_vm4, %v1221_v37  ;;  %v1163_v39 = vld [vmem:[%s1418_s6] sm:$0xff]   ;;  %v1223_v46 = vmov 0   ;;  %vm781_vm6 = vcmask 7168   ;;  %v746_v53 = vld [vmem:[#allocation2 + $0x8] sm:$0xff]  ;;  %v789_v3 = vstv %s1063_s24  ;;  %p1064_p10 = scmp.ne.s32.totalorder %s1208_s15, 1 }
 0x321   : > { %1094 = vmatpush3.bf16.msra.mxu0 %v1161_v36  ;;  %v1367_v45 = vshrl.u32 %v786_v44, 7  ;;  %1159 = vset.pattern.permute.xlu1 %v1223_v46  ;;  %v791_v48 = vld [vmem:[%s1420_s8] sm:$0x3]  ;;  %v787_v2 = vand.u32 127, %v786_v44  ;;  %v755_v14 = vld [vmem:[#allocation3] sm:$0xff]  ;;  %v756_v18 = vld [vmem:[#allocation3 + $0x8] sm:$0xff] }
 0x322   : > { %1095 = vmatprep.subr.bf16.mxu0 %v1221_v37  ;;  %1160 = vset.pattern.permute.xlu0 %v1223_v46  ;;  %v745_v50 = vld [vmem:[#allocation2] sm:$0xff]  ;;  %v809_v26 = vld [vmem:[#allocation4 + $0x8] sm:$0xff]  ;;  %v1224_v32 = vmov (!%p1064_p10), 0   ;;  %s1225_s27 = smov (!%p1064_p10), 4   ;;  %vm889_vm9 = vcmask (!%p1064_p10), 1041409   ;;  %vm892_vm10 = vcmask (!%p1064_p10), 25600  }
 0x323   : > { %v794_v47 = vsub.s32 0, %v1367_v45  ;;  %v801_v55 = vsub.s32 1, %v1367_v45  ;;  %v790_v4 = vadd.s32 %v789_v3, %v787_v2  ;;  %v808_v20 = vld [vmem:[#allocation4] sm:$0xff]  ;;  %1173 = vset.pattern.permute.xlu0 (!%p1064_p10), %v1224_v32  ;;  %vm899_vm11 = vcmask (!%p1064_p10), 58400  }
 0x324   : > { %v838_v29 = vld [vmem:[%s1421_s9] sm:$0x3] (!%p1064_p10) }
 0x325   : > { %1096 = vmatpush3.bf16.msra.mxu0 %v1162_v38  ;;  %v795_v49 = vrot.slane %v791_v48, %v794_v47  ;;  %v802_v59 = vrot.slane %v791_v48, %v801_v55  ;;  %v849_v30 = vrot.slane (!%p1064_p10), %v838_v29, %v801_v55  ;;  %v842_v31 = vrot.slane (!%p1064_p10), %v838_v29, %v794_v47  ;;  %v894_v33 = vld [vmem:[#allocation5] sm:$0x3] (!%p1064_p10) }
 0x326   : > { %v869_v2 = vld [vmem:[#allocation5] sm:$0x3] (!%p1064_p10) }
 0x327   : > { %v881_v3 = vrot.slane (!%p1064_p10), %v869_v2, 1 }
 0x328   : > { %1098 = vmatmul.mubr.msk.bf16.vlgmr.msra.gmra.mrb[0].mxu0 %vm696_vm5, %v1163_v39 }
 0x3fb   : > { %v734_v40 = vpop.f32.mrb[0].mxu0 }
 0x3fc   : > { %741 = vmax.xlane.f32.xlu0 %v734_v40  ;;  %v1099_v41 = vpop.f32.mrb[1].mxu0 }
 0x3fd   : > { %v737_v42 = vpop.f32.mrb[2].mxu0 }
 0x3fe   : > { %v1100_v43 = vpop.f32.mrb[3].mxu0 }
 0x400   : > { %743 = vmax.xlane.f32.xlu0 %v737_v42 }
 0x416   : > { %797 = vbcast.lane.b32.xlu0 %v795_v49, 256 }
 0x489   : > { %v742_v51 = vpop.xlane.xlu0 %741 }
 0x48a   : > { %v747_v52 = vmax.f32 %v745_v50, %v742_v51 }
 0x48c   : > { %v749_v54 = vsub.f32 %v745_v50, %v747_v52  ;;  %784 = vst.msk [vmem:[#allocation2] sm:$0xff] %vm781_vm6, %v747_v52  ;;  %761 = vperm.xlu1 %1159, %v747_v52  }
 0x48d   : > { %v744_v56 = vpop.xlane.xlu0 %743 }
 0x48e   : > { %v748_v57 = vmax.f32 %v746_v53, %v744_v56  ;;  %v751_v11 = vmul.f32 1.442695, %v749_v54 }
 0x490   : > { %v750_v58 = vsub.f32 %v746_v53, %v748_v57  ;;  %785 = vst.msk [vmem:[#allocation2 + $0x8] sm:$0xff] %vm781_vm6, %v748_v57  ;;  %766 = vperm.xlu1 %1159, %v748_v57  }
 0x491   : > { %v798_v5 = vpop.permute.xlu0 %797 }
 0x492   : > { %vm806_vm7 = vcmp.eq.s32.totalorder %v790_v4, %v798_v5  ;;  %v753_v12 = vmul.f32 1.442695, %v750_v58 }
 0x493   : > { %v810_v9 = vsel %vm806_vm7, %v734_v40, 0.0  ;;  %v826_v43 = vld [vmem:[#allocation2] sm:$0xff] (!%p1064_p10) }
 0x494   : > { %804 = vbcast.lane.b32.xlu1 %v802_v59, 256 }
 0x495   : > { %1172 = vset.pattern.permute.xlu1 (!%p1064_p10), %v1224_v32 }
 0x497   : > { %v827_v38 = vld [vmem:[#allocation2 + $0x8] sm:$0xff] (!%p1064_p10) }
 0x50b   : > { %v762_v60 = vpop.permute.xlu1 %761 }
 0x50c   : > { %v769_v61 = vsub.f32 %v734_v40, %v762_v60 }
 0x50e   : > { %v771_v62 = vmul.f32 1.442695, %v769_v61 }
 0x50f   : > { %v767_v63 = vpop.permute.xlu1 %766 }
 0x510   : > { %1164 = vpow2.f32 %v771_v62  ;;  %v770_v0 = vsub.f32 %v737_v42, %v767_v63 }
 0x512   : > { %v773_v1 = vmul.f32 1.442695, %v770_v0 }
 0x513   : > { %v805_v7 = vpop.permute.xlu1 %804 }
 0x514   : > { %1166 = vpow2.f32 %v773_v1  ;;  %vm807_vm8 = vcmp.eq.s32.totalorder %v790_v4, %v805_v7 }
 0x515   : > { %v811_v10 = vsel %vm807_vm8, %v737_v42, 0.0  ;;  %1168 = vpow2.f32 %v751_v11 }
 0x516   : > { %1170 = vpow2.f32 %v753_v12 }
 0x51a   : > { %v1165_v6 = vpop.eup %1164 }
 0x51b   : > { %775 = vadd.xlane.f32.xlu1 %v1165_v6 }
 0x51e   : > { %v1167_v8 = vpop.eup %1166 }
 0x51f   : > { %777 = vadd.xlane.f32.xlu0 %v1167_v8  ;;  %812 = vadd.xlane.f32.xlu1 %v810_v9  ;;  %v1169_v13 = vpop.eup %1168 }
 0x520   : > { %v757_v15 = vmul.f32 %v1169_v13, %v755_v14  ;;  %v1171_v16 = vpop.eup %1170 }
 0x521   : > { %v758_v21 = vmul.f32 %v1171_v16, %v756_v18 }
 0x523   : > { %814 = vadd.xlane.f32.xlu1 %v811_v10 }
 0x535   : > { %851 = vbcast.lane.b32.xlu0 (!%p1064_p10), %v849_v30, 256 }
 0x539   : > { %844 = vbcast.lane.b32.xlu0 (!%p1064_p10), %v842_v31, 256 }
 0x53d   : > { %896 = vrot.lane.b32.xlu0 (!%p1064_p10), %v894_v33, %s1225_s27 }
 0x5a8   : > { %v776_v17 = vpop.xlane.xlu1 %775 }
 0x5a9   : > { %v779_v19 = vadd.f32 %v776_v17, %v757_v15 }
 0x5ab   : > { %782 = vst.msk [vmem:[#allocation3] sm:$0xff] %vm781_vm6, %v779_v19 }
 0x5ac   : > { %v813_v22 = vpop.xlane.xlu1 %812  ;;  %v778_v23 = vpop.xlane.xlu0 %777 }
 0x5ad   : > { %v816_v24 = vadd.f32 %v813_v22, %v808_v20  ;;  %v780_v25 = vadd.f32 %v778_v23, %v758_v21  ;;  %823 = sbr.rel (%p1064_p10) target bundleno = 1630 (0x65e), region = 109 }
 0x5af   : > { %818 = vst.msk [vmem:[#allocation4] sm:$0xff] %vm781_vm6, %v816_v24  ;;  %783 = vst.msk [vmem:[#allocation3 + $0x8] sm:$0xff] %vm781_vm6, %v780_v25 }
 0x5b0   : > { %v815_v27 = vpop.xlane.xlu1 %814  ;;  %v852_v47 = vpop.permute.xlu0 (!%p1064_p10), %851 }
 0x5b1   : > { %v817_v28 = vadd.f32 %v815_v27, %v809_v26 }
 0x5b2   : > { %v830_v35 = vld [vmem:[#allocation3] sm:$0xff] (!%p1064_p10) }
 0x5b3   : > { %819 = vst.msk [vmem:[#allocation4 + $0x8] sm:$0xff] %vm781_vm6, %v817_v28 }
 0x5b4   : > { %v845_v52 = vpop.permute.xlu0 %844 }
 0x5b6   : > { %v831_v34 = vld [vmem:[#allocation3 + $0x8] sm:$0xff]  ;;  %v824_v42 = vld [vmem:[#allocation4] sm:$0xff] }
 0x5b7   : > { %1174 = vlog2.f32 %v831_v34  ;;  %v828_v45 = vsub.f32 %v824_v42, %v826_v43 }
 0x5b8   : > { %1176 = vlog2.f32 %v830_v35  ;;  %v897_v9 = vpop.permute.xlu0 %896 }
 0x5ba   : > { %v825_v37 = vld [vmem:[#allocation4 + $0x8] sm:$0xff] }
 0x5bb   : > { %v829_v39 = vsub.f32 %v825_v37, %v827_v38 }
 0x5c1   : > { %v1175_v36 = vpop.eup %1174 }
 0x5c2   : > { %v835_v40 = vmul.f32 0.6931472, %v1175_v36  ;;  %v1177_v41 = vpop.eup %1176 }
 0x5c3   : > { %v833_v46 = vmul.f32 0.6931472, %v1177_v41 }
 0x5c4   : > { %v837_v44 = vsub.f32 %v829_v39, %v835_v40 }
 0x5c5   : > { %v836_v49 = vsub.f32 %v828_v45, %v833_v46 }
 0x5c6   : > { %v854_v48 = vmul.f32 %v852_v47, %v837_v44 }
 0x5c7   : > { %v853_v53 = vmul.f32 %v845_v52, %v836_v49 }
 0x5c8   : > { %v862_v50 = vsel %vm781_vm6, %v854_v48, 0.0 }
 0x5c9   : > { %v863_v51 = vrot.slane %v862_v50, 4  ;;  %v855_v55 = vsel %vm781_vm6, %v853_v53, 0.0 }
 0x5ca   : > { %v856_v57 = vrot.slane %v855_v55, 4 }
 0x5cb   : > { %v864_v54 = vadd.f32 %v863_v51, %v862_v50 }
 0x5cc   : > { %v857_v58 = vadd.f32 %v856_v57, %v855_v55 }
 0x5cd   : > { %v865_v56 = vrot.slane %v864_v54, 2 }
 0x5ce   : > { %v858_v60 = vrot.slane %v857_v58, 2 }
 0x5cf   : > { %v866_v59 = vadd.f32 %v865_v56, %v864_v54 }
 0x5d0   : > { %v859_v62 = vadd.f32 %v858_v60, %v857_v58 }
 0x5d1   : > { %v867_v61 = vrot.slane %v866_v59, 1 }
 0x5d2   : > { %v860_v0 = vrot.slane %v859_v62, 1 }
 0x5d3   : > { %v868_v63 = vadd.f32 %v867_v61, %v866_v59 }
 0x5d4   : > { %v861_v1 = vadd.f32 %v860_v0, %v859_v62 }
 0x5d5   : > { %877 = vperm.xlu1 %1172, %v868_v63  }
 0x5d9   : > { %872 = vperm.xlu1 %1172, %v861_v1  }
 0x654   : > { %v878_v4 = vpop.permute.xlu1 %877 }
 0x655   : > { %v885_v5 = vmul.f32 %v881_v3, %v878_v4 }
 0x657   : > { %v888_v7 = vrot.slane %v885_v5, 7 }
 0x658   : > { %v873_v6 = vpop.permute.xlu1 %872 }
 0x659   : > { %v884_v8 = vmul.f32 %v873_v6, %v869_v2 }
 0x65b   : > { %v890_v10 = vsel %vm889_vm9, %v888_v7, %v884_v8 }
 0x65c   : > { %893 = vst.msk [vmem:[%s1422_s10] sm:$0x3] %vm892_vm10, %v890_v10 }
 0x65d   : > { %900 = vst.msk [vmem:[%s1422_s10] sm:$0x3] %vm899_vm11, %v897_v9 }
 0x65e PF: > { %s20_s17 = sadd.s32 1, %s1216_s17   ;;  %s1423_s13 = smov %s1204_s14 }
 0x65f   : > { %p17_p11 = scmp.ge.s32.totalorder %s20_s17, 4   ;;  %s1424_s14 = smov %s1316_s21 }
 0x660   : > { %s1425_s15 = smov %s1212_s16  ;;  %s1426_s16 = smov %s1428_s18 }
 0x661   :  { %19 = sbr.rel (!%p17_p11) target bundleno = 3 (0x3), region = 159 }

</bundles_post_ra>
